<compile_context>
chip_gen: v7x
topology: tpu7x:2x2x1
jax: 0.10.0
libtpu: 0.0.40
codegen_flags: <defaults>
</compile_context>

<pallas_src>
import jax
import jax.numpy as jnp
from jax.experimental import pallas as pl
from jax.experimental.pallas import tpu as pltpu

_LANE = 128
_SUBLANE = 8


def _cdiv(a: int, b: int) -> int:
    return -(-a // b)


def _round_up(v: int, m: int) -> int:
    return _cdiv(v, m) * m


def _shifted_sigmoid_kernel(x_ref, p_ref, o_ref):
    # x: [tile_b, F]; p: [2, F] f32 (row 0 = mid, row 1 = half_range).
    # min + range*sigmoid(x) == mid + half_range * tanh(0.5*x)  (single EUP op).
    x = x_ref[...].astype(jnp.float32)
    mid = p_ref[0:1, :]
    half = p_ref[1:2, :]
    o_ref[...] = (mid + half * jnp.tanh(0.5 * x)).astype(o_ref.dtype)


def _choose_tile_b(B: int, row_bytes: int, target_block_bytes: int) -> int:
    """Pick a batch tile: byte-budgeted, multiple of 8, balanced block count."""
    if B <= _SUBLANE:
        return B  # single block equal to the full (tiny) batch dim
    budget_rows = max(_SUBLANE,
                      (target_block_bytes // max(row_bytes, 1))
                      // _SUBLANE * _SUBLANE)
    tile_b = min(budget_rows, _round_up(B, _SUBLANE))
    nblocks = _cdiv(B, tile_b)
    # v7x has 2 TensorCores; with "parallel" semantics an even block count
    # splits the grid evenly. No-op / harmless on single-TC v5e/v6e.
    if nblocks > 1 and nblocks % 2 == 1:
        nblocks += 1
        tile_b = min(tile_b, max(_SUBLANE, _round_up(_cdiv(B, nblocks), _SUBLANE)))
    return tile_b


def shifted_sigmoid(x: jax.Array, min_vals: jax.Array, max_vals: jax.Array,
                    *, target_block_bytes: int = 4 << 20) -> jax.Array:
    """x: [..., F]; min_vals/max_vals: [F]. Returns same shape/dtype as x."""
    orig_shape = x.shape
    F = orig_shape[-1]
    assert min_vals.shape == (F,) and max_vals.shape == (F,)

    x2 = x.reshape(-1, F)
    B = x2.shape[0]
    if B == 0:
        return x

    itemsize = jnp.dtype(x.dtype).itemsize
    tile_b = _choose_tile_b(B, F * itemsize, target_block_bytes)
    grid = (_cdiv(B, tile_b),)

    # Pack the per-feature params into a single (2, F) f32 operand.
    min_f32 = min_vals.astype(jnp.float32)
    half_f32 = 0.5 * (max_vals.astype(jnp.float32) - min_f32)
    params = jnp.stack([min_f32 + half_f32, half_f32], axis=0)  # (2, F)

    # VMEM: x + out blocks double-buffered, plus the tiny param tile + margin.
    block_bytes = tile_b * F * itemsize
    vmem_need = 4 * block_bytes + 4 * F * 4 + (1 << 20)
    vmem_limit = int(min(max(vmem_need, 16 << 20), 48 << 20))  # v5e/v6e/v7x safe

    out = pl.pallas_call(
        _shifted_sigmoid_kernel,
        out_shape=jax.ShapeDtypeStruct((B, F), x.dtype),
        grid_spec=pltpu.PrefetchScalarGridSpec(
            num_scalar_prefetch=0,
            grid=grid,
            in_specs=[
                pl.BlockSpec((tile_b, F), lambda i: (i, 0)),
                pl.BlockSpec((2, F), lambda i: (0, 0)),
            ],
            out_specs=pl.BlockSpec((tile_b, F), lambda i: (i, 0)),
        ),
        compiler_params=pltpu.CompilerParams(
            dimension_semantics=("parallel",),
            vmem_limit_bytes=vmem_limit,
        ),
    )(x2, params)

    return out.reshape(orig_shape)


if __name__ == "__main__":
    key = jax.random.PRNGKey(0)
    kx, kmin, krange = jax.random.split(key, 3)

    # Small, deliberately non-aligned shapes (exercise ragged/masked blocks).
    shape = (2, 3, 37)
    F = shape[-1]
    x = jax.random.normal(kx, shape, dtype=jnp.float32)
    min_vals = jax.random.normal(kmin, (F,), dtype=jnp.float32)
    max_vals = min_vals + jax.nn.softplus(
        jax.random.normal(krange, (F,), dtype=jnp.float32))

    out = jax.block_until_ready(shifted_sigmoid(x, min_vals, max_vals))
    ref = min_vals + (max_vals - min_vals) * jax.nn.sigmoid(x)
    assert out.shape == shape and out.dtype == x.dtype
    assert jnp.allclose(out, ref, atol=1e-5, rtol=1e-5)

    # Multi-block, ragged-last-block case (small block budget forces >1 block
    # and exercises the even-block-count balancing + boundary masking).
    B2, F2 = 1040, 256
    x2 = jax.random.normal(kx, (B2, F2), dtype=jnp.float32)
    mn2 = jax.random.normal(kmin, (F2,), dtype=jnp.float32)
    mx2 = mn2 + jax.nn.softplus(jax.random.normal(krange, (F2,), dtype=jnp.float32))
    out2 = jax.block_until_ready(
        shifted_sigmoid(x2, mn2, mx2, target_block_bytes=1 << 18))
    ref2 = mn2[None, :] + (mx2 - mn2)[None, :] * jax.nn.sigmoid(x2)
    assert jnp.allclose(out2, ref2, atol=1e-5, rtol=1e-5)

    print("KERNEL_OK")
</pallas_src>

<mosaic_0001>
module attributes {stable_mosaic.version = 11 : i64} {
  func.func @_shifted_sigmoid_kernel(%arg0: i32, %arg1: memref<6x37xf32, #tpu.memory_space<vmem>>, %arg2: memref<2x37xf32, #tpu.memory_space<vmem>>, %arg3: memref<6x37xf32, #tpu.memory_space<vmem>>) attributes {dimension_semantics = [#tpu.dimension_semantics<parallel>], iteration_bounds = array<i64: 1>, scalar_prefetch = 0 : i64, scratch_operands = 0 : i64, tpu.core_type = #tpu.core_type<tc>, window_params = [{transform_indices = @transform_0, window_bounds = array<i64: 6, 37>}, {pipeline_mode = #tpu.pipeline_mode<synchronous>, transform_indices = @transform_1, window_bounds = array<i64: 2, 37>}, {transform_indices = @transform_2, window_bounds = array<i64: 6, 37>}]} {
    %c0 = arith.constant 0 : index
    %c0_0 = arith.constant 0 : index
    %0 = vector.load %arg1[%c0, %c0_0] : memref<6x37xf32, #tpu.memory_space<vmem>>, vector<6x37xf32>
    %c0_1 = arith.constant 0 : index
    %c0_2 = arith.constant 0 : index
    %1 = vector.load %arg2[%c0_1, %c0_2] : memref<2x37xf32, #tpu.memory_space<vmem>>, vector<1x37xf32>
    %c1 = arith.constant 1 : index
    %c0_3 = arith.constant 0 : index
    %2 = vector.load %arg2[%c1, %c0_3] : memref<2x37xf32, #tpu.memory_space<vmem>>, vector<1x37xf32>
    %cst = arith.constant 5.000000e-01 : f32
    %3 = vector.broadcast %cst : f32 to vector<6x37xf32>
    %4 = arith.mulf %3, %0 : vector<6x37xf32>
    %5 = math.tanh %4 : vector<6x37xf32>
    %6 = vector.broadcast %2 : vector<1x37xf32> to vector<6x37xf32>
    %7 = arith.mulf %6, %5 : vector<6x37xf32>
    %8 = vector.broadcast %1 : vector<1x37xf32> to vector<6x37xf32>
    %9 = arith.addf %8, %7 : vector<6x37xf32>
    %c0_4 = arith.constant 0 : index
    %c0_5 = arith.constant 0 : index
    %10 = vector.load %arg3[%c0_4, %c0_5] : memref<6x37xf32, #tpu.memory_space<vmem>>, vector<6x37xf32>
    tpu.vector_store %arg3[%c0_4, %c0_5], %9 {strides = array<i32>} : memref<6x37xf32, #tpu.memory_space<vmem>>, vector<6x37xf32>,
    return
  }
  func.func @transform_0(%arg0: i32) -> (i32, i32) {
    %c0_i32 = arith.constant 0 : i32
    %c0_i32_0 = arith.constant 0 : i32
    return %arg0, %c0_i32 : i32, i32
  }
  func.func @transform_1(%arg0: i32) -> (i32, i32) {
    %c0_i32 = arith.constant 0 : i32
    %c0_i32_0 = arith.constant 0 : i32
    %c0_i32_1 = arith.constant 0 : i32
    return %c0_i32, %c0_i32_0 : i32, i32
  }
  func.func @transform_2(%arg0: i32) -> (i32, i32) {
    %c0_i32 = arith.constant 0 : i32
    %c0_i32_0 = arith.constant 0 : i32
    return %arg0, %c0_i32 : i32, i32
  }
}

</mosaic_0001>

<bundles_post_ra>
// kernel: tpu_custom_call.1
= control target key start
LH: loop header
LB: loop body
LE: loop exit
PB: predicated region body
PF: predicated region fallthrough
CT: control target
= control target key end

     0   :  { %7 = vsyncpa [#allocation3], 0  ;;  %s157_s0 = inlined_call_operand.hbm [shape: f32[6,37], index: 0, kind: input, shape index: {}]   ;;  %s158_s1 = inlined_call_operand.vmem [shape: f32[2,37], index: 1, kind: input, shape index: {}]   ;;  %s159_s2 = inlined_call_operand.hbm [shape: f32[6,37], index: 2, kind: output, shape index: {}]  }
   0x1   :  { %8 = vsyncpa [#allocation4], 0  ;;  %s110_s9 = smov [#allocation2]   ;;  %s62_s13 = scalar_lea.hbm %s157_s0, 128 }
   0x2   :  { %s15_s10 = sshll.u32 %s110_s9, 4  ;;  %p63_p0 = scmp.ne.s32.totalorder %s157_s0, %s62_s13  ;;  %s16_s10 = int_to_ptr.vmem [resolvable:$true] %s15_s10 }
   0x3   :  { %p66_p1 = scmp.lt.u32.totalorder %s62_s13, %s157_s0 }
   0x5   :  { %p68_p2 = pnand %p66_p1, %p63_p0 }
   0x7   :  { %71 = shalt.err (!%p68_p2)
}
   0x8   :  { %s72_s18 = scalar_lea.vmem %s16_s10, 128  ;;  %p77_p4 = scmp.lt.s32.totalorder %s16_s10, %s16_s10 }
   0x9   :  { %p73_p3 = scmp.ne.s32.totalorder %s16_s10, %s72_s18  ;;  %p78_p5 = scmp.lt.s32.totalorder %s72_s18, %s72_s18 }
   0xb   :  { %p79_p6 = por %p78_p5, %p77_p4 }
   0xd   :  { %p80_p7 = pnand %p79_p6, %p73_p3 }
   0xf   :  { %83 = shalt.err (!%p80_p7)
}
  0x10   :  { %18 = dma.hbm_to_vmem [thread:$0]  %s157_s0, 128, %s16_s10, [#allocation3]  }
  0x11   :  { %106 = dma.done.wait [#allocation3], 128  }
  0x12   :  { %107 = vsyncadd [#allocation3], 4294967168  ;;  %v24_v0 = vld [vmem:[#allocation2] sm:$0x3f]  ;;  %s111_s25 = smov [#allocation5]   ;;  %vm39_vm0 = vcmask 300032  }
  0x13   :  { %v27_v1 = vmul.f32 0.5, %v24_v0  ;;  %v56_v2 = vld [vmem:[%s158_s1 + $0x1] ss:$0 sm:$0xff]  ;;  %v57_v4 = vld [vmem:[%s158_s1] ss:$0 sm:$0xff]  ;;  %s47_s26 = sshll.u32 %s111_s25, 4  ;;  %s48_s26 = int_to_ptr.vmem [resolvable:$true] %s47_s26 }
  0x14   :  { %s84_s0 = scalar_lea.vmem %s48_s26, 128  ;;  %p89_p9 = scmp.lt.s32.totalorder %s48_s26, %s48_s26 }
  0x15   :  { %60 = vtanh.f32 %v27_v1  ;;  %p85_p8 = scmp.ne.s32.totalorder %s48_s26, %s84_s0  ;;  %p90_p10 = scmp.lt.s32.totalorder %s84_s0, %s84_s0 }
  0x17   :  { %p91_p11 = por %p90_p10, %p89_p9 }
  0x19   :  { %p92_p12 = pnand %p91_p11, %p85_p8 }
  0x1f   :  { %v61_v3 = vpop.eup %60 }
  0x20   :  { %v33_v5 = vmul.f32 %v61_v3, %v56_v2 }
  0x22   :  { %v38_v6 = vadd.f32 %v57_v4, %v33_v5 }
  0x24   :  { %40 = vst.msk [vmem:[#allocation5] sm:$0x3f] %vm39_vm0, %v38_v6 }
  0x25   :  { %95 = shalt.err (!%p92_p12)
}
  0x26   :  { %s96_s29 = scalar_lea.hbm %s159_s2, 128 }
  0x27   :  { %p97_p13 = scmp.ne.s32.totalorder %s159_s2, %s96_s29  ;;  %p100_p0 = scmp.lt.u32.totalorder %s96_s29, %s159_s2 }
  0x29   :  { %p102_p1 = pnand %p100_p0, %p97_p13 }
  0x2b   :  { %105 = shalt.err (!%p102_p1)
}
  0x2c   :  { %50 = dma.vmem_to_hbm [thread:$0]  %s48_s26, 128, %s159_s2, [#allocation4]  }
  0x2d   :  { %108 = dma.done.wait [#allocation4], 128  }
  0x2e   :  { %109 = vsyncadd [#allocation4], 4294967168 }
  0x2f   :  { %54 = vsyncpa [#allocation3], 1 }
  0x30   :  { %55 = vsyncpa [#allocation4], 1 }

</bundles_post_ra>
